<compile_context>
chip_gen: v7x
topology: tpu7x:2x2x1
jax: 0.10.0
libtpu: 0.0.40
codegen_flags: <defaults>
</compile_context>

<pallas_src>
import functools

import jax
import jax.numpy as jnp
from jax import lax
from jax.experimental import pallas as pl
from jax.experimental.pallas import tpu as pltpu

GAMMA = 2  # module default


def _round_up(x: int, m: int) -> int:
    return ((x + m - 1) // m) * m


def _focal_loss_kernel(logits_ref, targets_ref, out_ref, *, n_true, tile_m,
                       gamma, scale):
    # logits_ref : (TM, Cp) native dtype in VMEM (class-padded with -1e30)
    # targets_ref: (TM, 1)  int32 in VMEM
    # out_ref    : (1, 1)   f32 in SMEM — running accumulator / final result
    i = pl.program_id(0)

    @pl.when(i == 0)
    def _init():
        out_ref[0, 0] = jnp.float32(0.0)

    x = logits_ref[...].astype(jnp.float32)               # (TM, Cp)
    tgt = targets_ref[...]                                 # (TM, 1) int32

    # Numerically-stable log-sum-exp over the class (lane) axis.
    m = jnp.max(x, axis=-1, keepdims=True)                 # (TM, 1)
    sumexp = jnp.sum(jnp.exp(x - m), axis=-1, keepdims=True)

    # Target logit via masked row-sum (no explicit one-hot tensor).
    cls_ids = lax.broadcasted_iota(jnp.int32, x.shape, 1)  # (TM, Cp)
    tgt_logit = jnp.sum(jnp.where(cls_ids == tgt, x, 0.0),
                        axis=-1, keepdims=True)            # (TM, 1)

    ce = jnp.log(sumexp) - (tgt_logit - m)                  # per-sample CE
    ce = jnp.maximum(ce, 0.0)                               # guard rounding < 0
    pt = jnp.exp(-ce)
    one_minus_pt = 1.0 - pt

    # gamma is a static Python value: unroll integer powers (gamma=2 -> square).
    if float(gamma) == float(int(gamma)) and gamma >= 0:
        focal = jnp.ones_like(one_minus_pt)
        for _ in range(int(gamma)):
            focal = focal * one_minus_pt
    else:
        focal = jnp.power(jnp.maximum(one_minus_pt, 0.0), gamma)
    f_loss = focal * ce                                     # (TM, 1)

    # Mask rows that are padding in the final tile.
    row_ids = i * tile_m + lax.broadcasted_iota(jnp.int32, f_loss.shape, 0)
    f_loss = jnp.where(row_ids < n_true, f_loss, 0.0)

    out_ref[0, 0] = out_ref[0, 0] + jnp.sum(f_loss)

    @pl.when(i == pl.num_programs(0) - 1)
    def _finalize():
        out_ref[0, 0] = out_ref[0, 0] * jnp.float32(scale)


def focal_loss(logits: jax.Array, targets: jax.Array, *, gamma=GAMMA,
               reduction: str = "mean") -> jax.Array:
    """logits: [N, C] float (f32 or bf16), targets: [N] int class ids -> scalar f32."""
    # TODO(synk): alpha (per-class weights) not implemented; module default alpha=None.
    n, c = logits.shape

    # Lane-dense class axis: pad C up to a multiple of 128.
    cp = max(128, _round_up(c, 128))
    itemsize = jnp.dtype(logits.dtype).itemsize

    # Largest row-tile such that one logits buffer is ~2 MiB (double-buffered by
    # BlockSpec -> ~4 MiB), comfortable on v5e/v6e/v7x scoped-VMEM defaults.
    target_bytes = 2 * 1024 * 1024
    tm = max(8, min(_round_up(n, 8), ((target_bytes // (cp * itemsize)) // 8) * 8))
    n_pad = _round_up(n, tm)

    logits_p = logits
    if cp != c:
        logits_p = jnp.pad(logits_p, ((0, 0), (0, cp - c)), constant_values=-1e30)
    if n_pad != n:
        logits_p = jnp.pad(logits_p, ((0, n_pad - n), (0, 0)))

    tgt_p = targets.astype(jnp.int32).reshape(n, 1)
    if n_pad != n:
        tgt_p = jnp.pad(tgt_p, ((0, n_pad - n), (0, 0)))

    scale = (1.0 / n) if reduction == "mean" else 1.0
    kernel = functools.partial(_focal_loss_kernel, n_true=n, tile_m=tm,
                               gamma=gamma, scale=scale)

    out = pl.pallas_call(
        kernel,
        out_shape=jax.ShapeDtypeStruct((1, 1), jnp.float32),
        grid=(n_pad // tm,),
        in_specs=[
            pl.BlockSpec((tm, cp), lambda i: (i, 0)),   # logits tile
            pl.BlockSpec((tm, 1), lambda i: (i, 0)),    # targets tile
        ],
        out_specs=pl.BlockSpec(memory_space=pltpu.SMEM),  # scalar accumulator
        compiler_params=pltpu.CompilerParams(
            dimension_semantics=("arbitrary",),           # reduction axis
            vmem_limit_bytes=32 * 1024 * 1024,
        ),
    )(logits_p, tgt_p)
    return out[0, 0]


def _reference(logits, targets, gamma=GAMMA):
    # Pure-JAX reference of the PyTorch forward (alpha=None, gamma=2, mean).
    logp = jax.nn.log_softmax(logits.astype(jnp.float32), axis=-1)
    ce = -jnp.take_along_axis(logp, targets[:, None].astype(jnp.int32), axis=-1)[:, 0]
    pt = jnp.exp(-ce)
    return jnp.mean((1.0 - pt) ** gamma * ce)


if __name__ == "__main__":
    key = jax.random.PRNGKey(0)
    k1, k2 = jax.random.split(key)

    N, C = 8, 32  # small shapes: batch of 8 samples, 32 classes
    logits = jax.random.normal(k1, (N, C), dtype=jnp.float32)
    targets = jax.random.randint(k2, (N,), 0, C, dtype=jnp.int32)

    loss = focal_loss(logits, targets)
    jax.block_until_ready(loss)

    ref = _reference(logits, targets)
    assert jnp.allclose(loss, ref, rtol=1e-5, atol=1e-5), (loss, ref)

    print("KERNEL_OK")
</pallas_src>

<mosaic_0001>
module attributes {stable_mosaic.version = 11 : i64} {
  func.func @_focal_loss_kernel(%arg0: i32, %arg1: memref<8x128xf32, #tpu.memory_space<vmem>>, %arg2: memref<8x1xi32, #tpu.memory_space<vmem>>, %arg3: memref<1x1xf32, #tpu.memory_space<smem>>) attributes {dimension_semantics = [#tpu.dimension_semantics<arbitrary>], iteration_bounds = array<i64: 1>, scalar_prefetch = 0 : i64, scratch_operands = 0 : i64, tpu.core_type = #tpu.core_type<tc>, window_params = [{transform_indices = @transform_0, window_bounds = array<i64: 8, 128>}, {transform_indices = @transform_1, window_bounds = array<i64: 8, 1>}, {transform_indices = @transform_2, window_bounds = array<i64: 1, 1>}]} {
    %c0_i32 = arith.constant 0 : i32
    %0 = arith.cmpi eq, %arg0, %c0_i32 : i32
    %1 = arith.extui %0 : i1 to i32
    %c0_i32_0 = arith.constant 0 : i32
    %2 = arith.cmpi ne, %1, %c0_i32_0 : i32
    scf.if %2 {
      %cst_20 = arith.constant 0.000000e+00 : f32
      %c0_21 = arith.constant 0 : index
      %c0_22 = arith.constant 0 : index
      %51 = memref.load %arg3[%c0_21, %c0_22] : memref<1x1xf32, #tpu.memory_space<smem>>
      memref.store %cst_20, %arg3[%c0_21, %c0_22] : memref<1x1xf32, #tpu.memory_space<smem>>
    } else {
    }
    %c0 = arith.constant 0 : index
    %c0_1 = arith.constant 0 : index
    %3 = vector.load %arg1[%c0, %c0_1] : memref<8x128xf32, #tpu.memory_space<vmem>>, vector<8x128xf32>
    %c0_2 = arith.constant 0 : index
    %c0_3 = arith.constant 0 : index
    %4 = vector.load %arg2[%c0_2, %c0_3] : memref<8x1xi32, #tpu.memory_space<vmem>>, vector<8x1xi32>
    %cst = arith.constant dense<0xFF800000> : vector<8xf32>
    %5 = vector.multi_reduction <maximumf>, %3, %cst [1] : vector<8x128xf32> to vector<8xf32>
    %6 = vector.shape_cast %5 : vector<8xf32> to vector<8x1xf32>
    %7 = vector.broadcast %6 : vector<8x1xf32> to vector<8x128xf32>
    %8 = arith.subf %3, %7 : vector<8x128xf32>
    %9 = math.exp %8 : vector<8x128xf32>
    %cst_4 = arith.constant dense<0.000000e+00> : vector<8xf32>
    %10 = vector.multi_reduction <add>, %9, %cst_4 [1] : vector<8x128xf32> to vector<8xf32>
    %11 = vector.shape_cast %10 : vector<8xf32> to vector<8x1xf32>
    %12 = tpu.iota {dimensions = array<i32: 1>} : vector<8x128xi32>
    %13 = vector.broadcast %4 : vector<8x1xi32> to vector<8x128xi32>
    %14 = arith.cmpi eq, %12, %13 : vector<8x128xi32>
    %cst_5 = arith.constant 0.000000e+00 : f32
    %15 = vector.broadcast %cst_5 : f32 to vector<8x128xf32>
    %16 = arith.select %14, %3, %15 : vector<8x128xi1>, vector<8x128xf32>
    %cst_6 = arith.constant dense<0.000000e+00> : vector<8xf32>
    %17 = vector.multi_reduction <add>, %16, %cst_6 [1] : vector<8x128xf32> to vector<8xf32>
    %18 = vector.shape_cast %17 : vector<8xf32> to vector<8x1xf32>
    %19 = math.log %11 : vector<8x1xf32>
    %20 = arith.subf %18, %6 : vector<8x1xf32>
    %21 = arith.subf %19, %20 : vector<8x1xf32>
    %cst_7 = arith.constant 0.000000e+00 : f32
    %22 = vector.broadcast %cst_7 : f32 to vector<8x1xf32>
    %23 = arith.maximumf %21, %22 : vector<8x1xf32>
    %cst_8 = arith.constant 0.000000e+00 : f32
    %24 = vector.broadcast %cst_8 : f32 to vector<8x1xf32>
    %25 = arith.subf %24, %23 : vector<8x1xf32>
    %26 = math.exp %25 : vector<8x1xf32>
    %cst_9 = arith.constant 1.000000e+00 : f32
    %27 = vector.broadcast %cst_9 : f32 to vector<8x1xf32>
    %28 = arith.subf %27, %26 : vector<8x1xf32>
    %cst_10 = arith.constant 1.000000e+00 : f32
    %29 = vector.broadcast %cst_10 : f32 to vector<8x1xf32>
    %30 = arith.mulf %29, %28 : vector<8x1xf32>
    %31 = arith.mulf %30, %28 : vector<8x1xf32>
    %32 = arith.mulf %31, %23 : vector<8x1xf32>
    %c8_i32 = arith.constant 8 : i32
    %33 = arith.muli %arg0, %c8_i32 : i32
    %34 = tpu.iota {dimensions = array<i32: 0>} : vector<8x1xi32>
    %35 = vector.broadcast %33 : i32 to vector<8x1xi32>
    %36 = arith.addi %35, %34 : vector<8x1xi32>
    %c8_i32_11 = arith.constant 8 : i32
    %37 = vector.broadcast %c8_i32_11 : i32 to vector<8x1xi32>
    %38 = arith.cmpi slt, %36, %37 : vector<8x1xi32>
    %cst_12 = arith.constant 0.000000e+00 : f32
    %39 = vector.broadcast %cst_12 : f32 to vector<8x1xf32>
    %40 = arith.select %38, %32, %39 : vector<8x1xi1>, vector<8x1xf32>
    %c0_13 = arith.constant 0 : index
    %c0_14 = arith.constant 0 : index
    %41 = memref.load %arg3[%c0_13, %c0_14] : memref<1x1xf32, #tpu.memory_space<smem>>
    %42 = vector.shape_cast %40 : vector<8x1xf32> to vector<1x8x1xf32>
    %cst_15 = arith.constant dense<0.000000e+00> : vector<1xf32>
    %43 = vector.multi_reduction <add>, %42, %cst_15 [1, 2] : vector<1x8x1xf32> to vector<1xf32>
    %44 = vector.shape_cast %43 : vector<1xf32> to vector<1x1x1xf32>
    %45 = vector.extract %44[0, 0, 0] : f32 from vector<1x1x1xf32>
    %46 = arith.addf %41, %45 : f32
    %c0_16 = arith.constant 0 : index
    %c0_17 = arith.constant 0 : index
    %47 = memref.load %arg3[%c0_16, %c0_17] : memref<1x1xf32, #tpu.memory_space<smem>>
    memref.store %46, %arg3[%c0_16, %c0_17] : memref<1x1xf32, #tpu.memory_space<smem>>
    %c0_i32_18 = arith.constant 0 : i32
    %48 = arith.cmpi eq, %arg0, %c0_i32_18 : i32
    %49 = arith.extui %48 : i1 to i32
    %c0_i32_19 = arith.constant 0 : i32
    %50 = arith.cmpi ne, %49, %c0_i32_19 : i32
    scf.if %50 {
      %c0_20 = arith.constant 0 : index
      %c0_21 = arith.constant 0 : index
      %51 = memref.load %arg3[%c0_20, %c0_21] : memref<1x1xf32, #tpu.memory_space<smem>>
      %cst_22 = arith.constant 1.250000e-01 : f32
      %52 = arith.mulf %51, %cst_22 : f32
      %c0_23 = arith.constant 0 : index
      %c0_24 = arith.constant 0 : index
      %53 = memref.load %arg3[%c0_23, %c0_24] : memref<1x1xf32, #tpu.memory_space<smem>>
      memref.store %52, %arg3[%c0_23, %c0_24] : memref<1x1xf32, #tpu.memory_space<smem>>
    } else {
    }
    return
  }
  func.func @transform_0(%arg0: i32) -> (i32, i32) {
    %c0_i32 = arith.constant 0 : i32
    %c0_i32_0 = arith.constant 0 : i32
    return %arg0, %c0_i32 : i32, i32
  }
  func.func @transform_1(%arg0: i32) -> (i32, i32) {
    %c0_i32 = arith.constant 0 : i32
    %c0_i32_0 = arith.constant 0 : i32
    return %arg0, %c0_i32 : i32, i32
  }
  func.func @transform_2(%arg0: i32) -> (i32, i32) {
    %c0_i32 = arith.constant 0 : i32
    %c0_i32_0 = arith.constant 0 : i32
    %c0_i32_1 = arith.constant 0 : i32
    return %c0_i32, %c0_i32_0 : i32, i32
  }
}

</mosaic_0001>

<bundles_post_ra>
// kernel: tpu_custom_call.1
= control target key start
LH: loop header
LB: loop body
LE: loop exit
PB: predicated region body
PF: predicated region fallthrough
CT: control target
= control target key end

     0   :  { %s147_s0 = inlined_call_operand.vmem [shape: f32[8,128], index: 0, kind: input, shape index: {}]   ;;  %s148_s1 = inlined_call_operand.vmem [shape: s32[8,1], index: 1, kind: input, shape index: {}]   ;;  %s149_s2 = inlined_call_operand.hbm [shape: f32[1,1], index: 2, kind: output, shape index: {}]  }
   0x1   :  { %v18_v0 = vld [vmem:[%s147_s0] sm:$0xff] }
   0x2   :  { %7 = vsyncpa [#allocation3], 0  ;;  %20 = vmax.xlane.f32.xlu0 %v18_v0  ;;  %v112_v1 = vmov 0   ;;  %v19_v2 = vld [vmem:[%s148_s1] sm:$0xff]  ;;  %v27_v6 = vlaneseq  ;;  %vm55_vm1 = vcmask 7168   ;;  %s100_s15 = scalar_lea.hbm %s149_s2, 16 }
   0x3   :  { %93 = vset.pattern.permute.xlu0 %v112_v1  ;;  %p101_p0 = scmp.ne.s32.totalorder %s149_s2, %s100_s15  ;;  %p104_p1 = scmp.lt.u32.totalorder %s100_s15, %s149_s2 }
   0x4   :  { %v28_v7 = vand.u32 127, %v27_v6 }
   0x5   :  { %p106_p2 = pnand %p104_p1, %p101_p0 }
  0x18   :  { %30 = vperm.xlu0 %93, %v19_v2  }
  0x8f   :  { %v21_v3 = vpop.xlane.xlu0 %20 }
  0x90   :  { %v22_v4 = vsub.f32 %v18_v0, %v21_v3 }
  0x92   :  { %v23_v5 = vmul.f32 1.442695, %v22_v4 }
  0x94   :  { %94 = vpow2.f32 %v23_v5 }
  0x97   :  { %v31_v8 = vpop.permute.xlu0 %30 }
  0x98   :  { %vm32_vm0 = vcmp.eq.s32.totalorder %v28_v7, %v31_v8 }
  0x99   :  { %v33_v10 = vsel %vm32_vm0, %v18_v0, 0.0 }
  0x9e   :  { %v95_v9 = vpop.eup %94 }
  0x9f   :  { %25 = vadd.xlane.f32.xlu1 %v95_v9 }
  0xa3   :  { %34 = vadd.xlane.f32.xlu1 %v33_v10 }
 0x12c   :  { %v26_v11 = vpop.xlane.xlu1 %25 }
 0x12d   :  { %96 = vlog2.f32 %v26_v11 }
 0x130   :  { %v35_v12 = vpop.xlane.xlu1 %34 }
 0x131   :  { %v38_v15 = vsub.f32 %v35_v12, %v21_v3 }
 0x137   :  { %v97_v13 = vpop.eup %96 }
 0x138   :  { %v37_v14 = vmul.f32 0.6931472, %v97_v13 }
 0x13a   :  { %v39_v16 = vsub.f32 %v37_v14, %v38_v15 }
 0x13c   :  { %v40_v17 = vmax.f32 %v39_v16, 0.0 }
 0x13e   :  { %v41_v18 = vsub.f32 0.0, %v40_v17 }
 0x140   :  { %v42_v19 = vmul.f32 1.442695, %v41_v18 }
 0x142   :  { %98 = vpow2.f32 %v42_v19 }
 0x14c   :  { %v99_v20 = vpop.eup %98 }
 0x14d   :  { %v44_v21 = vsub.f32 1.0, %v99_v20 }
 0x14f   :  { %v45_v22 = vmul.f32 %v44_v21, %v44_v21 }
 0x151   :  { %v46_v23 = vmul.f32 %v45_v22, %v40_v17 }
 0x153   :  { %v56_v24 = vsel %vm55_vm1, %v46_v23, 0.0 }
 0x154   :  { %57 = vadd.xlane.f32.xlu1 %v56_v24 }
 0x1e1   :  { %v58_v25 = vpop.xlane.xlu1 %57 }
 0x1e2   :  { %v59_v26 = vrot.slane %v58_v25, 4 }
 0x1e4   :  { %v60_v27 = vadd.f32 %v59_v26, %v58_v25 }
 0x1e6   :  { %v61_v28 = vrot.slane %v60_v27, 2 }
 0x1e8   :  { %v62_v29 = vadd.f32 %v61_v28, %v60_v27 }
 0x1ea   :  { %v63_v30 = vrot.slane %v62_v29, 1 }
 0x1ec   :  { %v64_v31 = vadd.f32 %v63_v30, %v62_v29 }
 0x1ee   :  { %88 = vpush %v64_v31 }
 0x21f   :  { %s89_s0 = spop %88 }
 0x220   :  { %s73_s1 = smul.f32 0.125, %s89_s0 }
 0x222   :  { %74 = sst [smem:[#allocation2]] %s73_s1 }
 0x223   :  { %109 = shalt.err (!%p106_p2)
}
 0x224   :  { %s113_s20 = smov [#allocation2]  }
 0x225   :  { %82 = dma.smem_to_hbm %s113_s20, 16, %s149_s2, [#allocation3]  }
 0x226   :  { %110 = dma.done.wait [#allocation3], 16  }
 0x227   :  { %111 = vsyncadd [#allocation3], 4294967280 }
 0x228   :  { %86 = sfence }
 0x229   :  { %87 = vsyncpa [#allocation3], 1 }

</bundles_post_ra>
